<compile_context>
chip_gen: v7x
topology: tpu7x:2x2x1
jax: 0.10.0
libtpu: 0.0.40
codegen_flags: <defaults>
</compile_context>

<pallas_src>
import functools
import math

import jax
import jax.numpy as jnp
import numpy as np
from jax.experimental import pallas as pl
from jax.experimental.pallas import tpu as pltpu

LANE = 128  # lane-pad the narrow (OUT=3) output to a full 128-lane width


# ----------------------------- Pallas kernel -------------------------------
def fused_forward_kernel(x_ref, w_ref, b_ref, o_ref):
    """One batch block of the fully-folded affine model.

    x_ref : (TB, Cin*L)   raw row-major flattened input block
    w_ref : (Cin*L, LANE) fully folded weights (cols >= OUT are zero)
    b_ref : (1, LANE)     fully folded bias    (cols >= OUT are zero)
    o_ref : (TB, LANE)
    """
    o_ref[...] = (
        jnp.dot(x_ref[...], w_ref[...], preferred_element_type=jnp.float32)
        + b_ref[...]
    ).astype(o_ref.dtype)


# ------------------------- one-time host-side folding ------------------------
def fold_params(P, C_in, L, eps=1e-5):
    """Exact eval-mode folding of conv/BN/pool/linear chain (numpy float64).

    Returns (W_total (Cin*L, LANE) f32, b_total (1, LANE) f32, OUT).
    Row order of W_total matches x.reshape(B, Cin*L) (NCW row-major).
    """
    f64 = lambda a: np.asarray(a, dtype=np.float64)
    w1, b1c = f64(P['w1']), f64(P['b1c'])
    w2, b2c = f64(P['w2']), f64(P['b2c'])
    wl1, bl1 = f64(P['wl1']), f64(P['bl1'])
    wl2, bl2 = f64(P['wl2']), f64(P['bl2'])
    g1, beta1, rm1, rv1 = f64(P['g1']), f64(P['beta1']), f64(P['rm1']), f64(P['rv1'])
    g2, beta2, rm2, rv2 = f64(P['g2']), f64(P['beta2']), f64(P['rm2']), f64(P['rv2'])

    F = w1.shape[0]
    C2 = w2.shape[0]
    H = wl1.shape[0]
    OUT = wl2.shape[0]
    assert w1.shape[2] == 2 and L % 16 == 0
    L2p = L // 16
    assert wl1.shape[1] == L2p * C2
    assert OUT <= LANE

    # BN folding (eval-mode running stats), conv biases folded too
    scale1 = g1 / np.sqrt(rv1 + eps)
    shift1 = (b1c - rm1) * scale1 + beta1
    scale2 = g2 / np.sqrt(rv2 + eps)
    shift2 = (b2c - rm2) * scale2 + beta2

    # Stage 1: conv1(2,2)+pool1 == 4-tap stride-4 conv (taps weight 0.5*w1[..,j%2]),
    # packed block-diagonal over output positions.
    w1_inner = 0.5 * np.stack([w1[:, :, j % 2] for j in range(4)], 0)       # (4,F,Cin)
    w1_inner = np.transpose(w1_inner, (0, 2, 1)).reshape(4 * C_in, F)
    W1 = np.kron(np.eye(4 * L2p), w1_inner)                                  # (L*Cin, L2p*4F)

    # Stage 2: conv2(2,2)+pool2 with BN1 scale folded into its input channels.
    w2_inner = 0.5 * np.stack([w2[:, :, j % 2] for j in range(4)], 0)        # (4,C2,F)
    w2_inner = np.transpose(w2_inner, (0, 2, 1)) * scale1[None, :, None]     # (4,F,C2)
    w2_inner = w2_inner.reshape(4 * F, C2)
    W2 = np.kron(np.eye(L2p), w2_inner)                                      # (L2p*4F, L2p*C2)

    # BN1 shift flows through conv2; fold it + BN2 scale/shift into Linear1.
    c2 = (w2[:, :, 0] + w2[:, :, 1]) @ shift1                                # (C2,)
    d2 = c2 * scale2 + shift2                                                # (C2,)
    wl1_r = wl1.reshape(H, C2, L2p)              # torch flatten index = ch*L2p + pos
    WL1 = np.transpose(wl1_r * scale2[None, :, None], (2, 1, 0)).reshape(L2p * C2, H)
    BL1 = bl1 + wl1_r.sum(axis=2) @ d2                                       # (H,)

    # Compose the whole affine chain into a single matrix/bias (exact).
    W_total = W1 @ W2 @ WL1 @ wl2.T                                          # (L*Cin, OUT)
    b_total = BL1 @ wl2.T + bl2                                              # (OUT,)

    # Bake NCW -> channels-last permutation into the row order:
    #   old row index = l*Cin + c   ->   new row index = c*L + l
    # so the kernel can consume x.reshape(B, Cin*L) directly.
    W_total = W_total.reshape(L, C_in, OUT).transpose(1, 0, 2).reshape(C_in * L, OUT)

    # Lane-pad OUT -> LANE with zero columns (unmasked lane-dense stores).
    W_pad = np.zeros((C_in * L, LANE), np.float64)
    W_pad[:, :OUT] = W_total
    b_pad = np.zeros((1, LANE), np.float64)
    b_pad[0, :OUT] = b_total

    return jnp.asarray(W_pad, jnp.float32), jnp.asarray(b_pad, jnp.float32), OUT


# ------------------------------ JAX wrapper ----------------------------------
@functools.partial(jax.jit, static_argnames=('out_dim',))
def model_forward_pallas(x, W_total, b_total, *, out_dim):
    """x: (B, C_in, L) float32 (PyTorch NCW).  Returns (B, out_dim) float32."""
    B, C_in, L = x.shape
    D = C_in * L
    assert W_total.shape == (D, LANE) and b_total.shape == (1, LANE)

    # Raw row-major flatten; NCW permutation is already baked into W_total rows.
    x_flat = x.reshape(B, D)

    # Batch blocking: one big block per call (grid is a serial loop on
    # v5e/v6e and splitting only pays on v7x when compute >> ~600-cycle step
    # overhead).  Tile only when the batch exceeds a generous VMEM-safe cap.
    TB = min(512, ((B + 7) // 8) * 8)          # multiple of 8 sublanes
    n_blk = math.ceil(B / TB)
    B_pad = n_blk * TB
    if B_pad != B:
        x_flat = jnp.pad(x_flat, ((0, B_pad - B), (0, 0)))

    out = pl.pallas_call(
        fused_forward_kernel,
        out_shape=jax.ShapeDtypeStruct((B_pad, LANE), jnp.float32),
        grid=(n_blk,),
        in_specs=[
            pl.BlockSpec((TB, D), lambda i: (i, 0)),
            pl.BlockSpec((D, LANE), lambda i: (0, 0)),
            pl.BlockSpec((1, LANE), lambda i: (0, 0)),
        ],
        out_specs=pl.BlockSpec((TB, LANE), lambda i: (i, 0)),
        compiler_params=pltpu.CompilerParams(
            dimension_semantics=("parallel",)),
    )(x_flat, W_total, b_total)
    return out[:B, :out_dim]


# --------------------------- pure-JAX reference ------------------------------
def _conv1d_ref(x, w, b, stride):
    B, C, L = x.shape
    O, _, K = w.shape
    Lout = (L - K) // stride + 1
    cols = jnp.stack([x[:, :, i * stride:i * stride + K] for i in range(Lout)],
                     axis=2)                              # (B, C, Lout, K)
    return jnp.einsum('bclk,ock->bol', cols, w) + b[None, :, None]


def _bn_ref(x, g, beta, rm, rv, eps=1e-5):
    return ((x - rm[None, :, None]) / jnp.sqrt(rv[None, :, None] + eps)
            * g[None, :, None] + beta[None, :, None])


def _pool_ref(x):
    B, C, L = x.shape
    return x.reshape(B, C, L // 2, 2).mean(-1)


def ref_forward(x, P):
    y = _pool_ref(_bn_ref(_conv1d_ref(x, P['w1'], P['b1c'], 2),
                          P['g1'], P['beta1'], P['rm1'], P['rv1']))
    y = _pool_ref(_bn_ref(_conv1d_ref(y, P['w2'], P['b2c'], 2),
                          P['g2'], P['beta2'], P['rm2'], P['rv2']))
    flat = y.reshape(y.shape[0], -1)
    h = flat @ P['wl1'].T + P['bl1']
    return h @ P['wl2'].T + P['bl2']


# ---------------------------------- main -------------------------------------
if __name__ == "__main__":
    # config: ai_input_dim=(4, 32), ai_conv_filters=8, ai_conv_kernel=2,
    #         ai_conv_stride=2, ai_hidden_dim=32, ai_output_dim=3,
    #         ai_init_range=0.1, dropout inactive (eval mode)
    B, C_in, L = 2, 4, 32
    F, K = 8, 2
    C2 = 2 * F
    H, OUT = 32, 3
    L2p = L // 16
    cls_in = L2p * C2
    init_range = 0.1

    key = jax.random.PRNGKey(0)
    ks = jax.random.split(key, 16)
    P = {
        'w1':  jax.random.uniform(ks[0], (F, C_in, K), jnp.float32, -init_range, init_range),
        'b1c': jax.random.uniform(ks[1], (F,), jnp.float32, -0.05, 0.05),
        'w2':  jax.random.uniform(ks[2], (C2, F, K), jnp.float32, -init_range, init_range),
        'b2c': jax.random.uniform(ks[3], (C2,), jnp.float32, -0.05, 0.05),
        'wl1': jax.random.uniform(ks[4], (H, cls_in), jnp.float32, -init_range, init_range),
        'bl1': jnp.zeros((H,), jnp.float32),
        'wl2': jax.random.uniform(ks[5], (OUT, H), jnp.float32, -init_range, init_range),
        'bl2': jnp.zeros((OUT,), jnp.float32),
        # BatchNorm eval-mode affine params + nontrivial running statistics
        'g1':    jax.random.uniform(ks[7], (F,), jnp.float32, 0.8, 1.2),
        'beta1': jax.random.uniform(ks[8], (F,), jnp.float32, -0.1, 0.1),
        'rm1':   jax.random.uniform(ks[9], (F,), jnp.float32, -0.1, 0.1),
        'rv1':   jax.random.uniform(ks[10], (F,), jnp.float32, 0.5, 1.5),
        'g2':    jax.random.uniform(ks[11], (C2,), jnp.float32, 0.8, 1.2),
        'beta2': jax.random.uniform(ks[12], (C2,), jnp.float32, -0.1, 0.1),
        'rm2':   jax.random.uniform(ks[13], (C2,), jnp.float32, -0.1, 0.1),
        'rv2':   jax.random.uniform(ks[14], (C2,), jnp.float32, 0.5, 1.5),
    }

    x = jax.random.normal(ks[6], (B, C_in, L), jnp.float32)

    # One-time fold (host, float64 -> f32); reused for every forward call.
    W_total, b_total, out_dim = fold_params(P, C_in, L)

    out = model_forward_pallas(x, W_total, b_total, out_dim=out_dim)
    out = jax.block_until_ready(out)

    ref = ref_forward(x, P)
    np.testing.assert_allclose(np.asarray(out), np.asarray(ref), atol=1e-4, rtol=1e-4)

    print("KERNEL_OK")
</pallas_src>

<mosaic_0001>
module attributes {stable_mosaic.version = 11 : i64} {
  func.func @fused_forward_kernel(%arg0: i32, %arg1: memref<8x128xf32, #tpu.memory_space<vmem>>, %arg2: memref<128x128xf32, #tpu.memory_space<vmem>>, %arg3: memref<1x128xf32, #tpu.memory_space<vmem>>, %arg4: memref<8x128xf32, #tpu.memory_space<vmem>>) attributes {dimension_semantics = [#tpu.dimension_semantics<parallel>], iteration_bounds = array<i64: 1>, scalar_prefetch = 0 : i64, scratch_operands = 0 : i64, tpu.core_type = #tpu.core_type<tc>, window_params = [{transform_indices = @transform_0, window_bounds = array<i64: 8, 128>}, {pipeline_mode = #tpu.pipeline_mode<synchronous>, transform_indices = @transform_1, window_bounds = array<i64: 128, 128>}, {pipeline_mode = #tpu.pipeline_mode<synchronous>, transform_indices = @transform_2, window_bounds = array<i64: 1, 128>}, {transform_indices = @transform_3, window_bounds = array<i64: 8, 128>}]} {
    %c0 = arith.constant 0 : index
    %c0_0 = arith.constant 0 : index
    %0 = vector.load %arg1[%c0, %c0_0] : memref<8x128xf32, #tpu.memory_space<vmem>>, vector<8x128xf32>
    %c0_1 = arith.constant 0 : index
    %c0_2 = arith.constant 0 : index
    %1 = vector.load %arg2[%c0_1, %c0_2] : memref<128x128xf32, #tpu.memory_space<vmem>>, vector<128x128xf32>
    %cst = arith.constant dense<0.000000e+00> : vector<8x128xf32>
    %2 = tpu.matmul %0, %1, %cst {dimension_numbers = #tpu.dot_dimension_numbers<[1], [0], [0], [1], [0, 0, 1, 1], [], []>} : vector<8x128xf32>, vector<128x128xf32>, vector<8x128xf32> -> vector<8x128xf32>
    %c0_3 = arith.constant 0 : index
    %c0_4 = arith.constant 0 : index
    %3 = vector.load %arg3[%c0_3, %c0_4] : memref<1x128xf32, #tpu.memory_space<vmem>>, vector<1x128xf32>
    %4 = vector.broadcast %3 : vector<1x128xf32> to vector<8x128xf32>
    %5 = arith.addf %2, %4 : vector<8x128xf32>
    %c0_5 = arith.constant 0 : index
    %c0_6 = arith.constant 0 : index
    %6 = vector.load %arg4[%c0_5, %c0_6] : memref<8x128xf32, #tpu.memory_space<vmem>>, vector<8x128xf32>
    tpu.vector_store %arg4[%c0_5, %c0_6], %5 {strides = array<i32>} : memref<8x128xf32, #tpu.memory_space<vmem>>, vector<8x128xf32>,
    return
  }
  func.func @transform_0(%arg0: i32) -> (i32, i32) {
    %c0_i32 = arith.constant 0 : i32
    %c0_i32_0 = arith.constant 0 : i32
    return %arg0, %c0_i32 : i32, i32
  }
  func.func @transform_1(%arg0: i32) -> (i32, i32) {
    %c0_i32 = arith.constant 0 : i32
    %c0_i32_0 = arith.constant 0 : i32
    %c0_i32_1 = arith.constant 0 : i32
    return %c0_i32, %c0_i32_0 : i32, i32
  }
  func.func @transform_2(%arg0: i32) -> (i32, i32) {
    %c0_i32 = arith.constant 0 : i32
    %c0_i32_0 = arith.constant 0 : i32
    %c0_i32_1 = arith.constant 0 : i32
    return %c0_i32, %c0_i32_0 : i32, i32
  }
  func.func @transform_3(%arg0: i32) -> (i32, i32) {
    %c0_i32 = arith.constant 0 : i32
    %c0_i32_0 = arith.constant 0 : i32
    return %arg0, %c0_i32 : i32, i32
  }
}

</mosaic_0001>

<bundles_post_ra>
// kernel: model_forward_pallas.1
= control target key start
LH: loop header
LB: loop body
LE: loop exit
PB: predicated region body
PF: predicated region fallthrough
CT: control target
= control target key end

     0   :  { %8 = vsyncpa [#allocation3], 0  ;;  %s235_s12 = smov [#allocation2]   ;;  %s282_s0 = inlined_call_operand.vmem [shape: f32[8,128], index: 0, kind: input, shape index: {}]   ;;  %s283_s1 = inlined_call_operand.hbm [shape: f32[128,128], index: 1, kind: input, shape index: {}]   ;;  %s284_s2 = inlined_call_operand.vmem [shape: f32[1,128], index: 2, kind: input, shape index: {}]   ;;  %s285_s3 = inlined_call_operand.vmem [shape: f32[8,128], index: 3, kind: output, shape index: {}]  }
   0x1   :  { %s16_s13 = sshll.u32 %s235_s12, 4  ;;  %s211_s16 = scalar_lea.hbm %s283_s1, 2048  ;;  %s17_s13 = int_to_ptr.vmem [resolvable:$true] %s16_s13 }
   0x2   :  { %p212_p0 = scmp.ne.s32.totalorder %s283_s1, %s211_s16  ;;  %p215_p1 = scmp.lt.u32.totalorder %s211_s16, %s283_s1 }
   0x4   :  { %p217_p2 = pnand %p215_p1, %p212_p0 }
   0x6   :  { %220 = shalt.err (!%p217_p2)
}
   0x7   :  { %s221_s21 = scalar_lea.vmem %s17_s13, 2048  ;;  %p226_p4 = scmp.lt.s32.totalorder %s17_s13, %s17_s13 }
   0x8   :  { %p222_p3 = scmp.ne.s32.totalorder %s17_s13, %s221_s21  ;;  %p227_p5 = scmp.lt.s32.totalorder %s221_s21, %s221_s21 }
   0xa   :  { %p228_p6 = por %p227_p5, %p226_p4 }
   0xc   :  { %p229_p7 = pnand %p228_p6, %p222_p3 }
   0xe   :  { %232 = shalt.err (!%p229_p7)
}
   0xf   :  { %s236_s22 = smov 128   ;;  %s237_s23 = smov 8  }
  0x10   :  { %22 = dma.hbm_to_vmem [thread:$0]  %s283_s1, 2048, %s17_s13, [#allocation3], %s236_s22, %s236_s22, %s237_s23  }
  0x11   :  { %233 = dma.done.wait [#allocation3], 2048  }
  0x12   :  { %234 = vsyncadd [#allocation3], 4294965248  ;;  %v238_v0 = vmov 0.0|0.0   ;;  %vm239_vm0 = vmmov 0   ;;  %v240_v1 = vmov 0.0   ;;  %v29_v2 = vld [vmem:[#allocation2] sm:$0xff] }
  0x13   :  { %181 = vmatprep.subr.bf16.mxu0 %v238_v0  ;;  %178 = vmatprep.mubr.msk.f32.mxu0 %vm239_vm0, %v240_v1  ;;  %v30_v3 = vld [vmem:[#allocation2 + $0x8] sm:$0xff]  ;;  %v31_v4 = vld [vmem:[#allocation2 + $0x10] sm:$0xff]  ;;  %v32_v6 = vld [vmem:[#allocation2 + $0x18] sm:$0xff] }
  0x14   :  { %v182_v5 = vpack.c.bf16 %v30_v3, %v29_v2  ;;  %v185_v7 = vpack.c.bf16 %v32_v6, %v31_v4  ;;  %v33_v8 = vld [vmem:[#allocation2 + $0x20] sm:$0xff]  ;;  %v34_v9 = vld [vmem:[#allocation2 + $0x28] sm:$0xff]  ;;  %v35_v11 = vld [vmem:[#allocation2 + $0x30] sm:$0xff] }
  0x15   :  { %v188_v10 = vpack.c.bf16 %v34_v9, %v33_v8  ;;  %v36_v12 = vld [vmem:[#allocation2 + $0x38] sm:$0xff]  ;;  %v37_v14 = vld [vmem:[#allocation2 + $0x40] sm:$0xff]  ;;  %v38_v15 = vld [vmem:[#allocation2 + $0x48] sm:$0xff] }
  0x16   :  { %183 = vmatpush3.bf16.msra.mxu0 %v182_v5  ;;  %v191_v13 = vpack.c.bf16 %v36_v12, %v35_v11  ;;  %v194_v16 = vpack.c.bf16 %v38_v15, %v37_v14  ;;  %v39_v17 = vld [vmem:[#allocation2 + $0x50] sm:$0xff]  ;;  %v40_v18 = vld [vmem:[#allocation2 + $0x58] sm:$0xff]  ;;  %v41_v20 = vld [vmem:[#allocation2 + $0x60] sm:$0xff] }
  0x17   :  { %184 = vmatprep.subr.bf16.mxu0 %v238_v0  ;;  %v197_v19 = vpack.c.bf16 %v40_v18, %v39_v17  ;;  %v42_v21 = vld [vmem:[#allocation2 + $0x68] sm:$0xff]  ;;  %v43_v23 = vld [vmem:[#allocation2 + $0x70] sm:$0xff]  ;;  %v44_v24 = vld [vmem:[#allocation2 + $0x78] sm:$0xff] }
  0x18   :  { %v200_v22 = vpack.c.bf16 %v42_v21, %v41_v20  ;;  %v203_v25 = vpack.c.bf16 %v44_v24, %v43_v23  ;;  %v28_v26 = vld [vmem:[%s282_s0] sm:$0xff] }
  0x19   :  { %v128_v27 = vld [vmem:[%s284_s2] ss:$0 sm:$0xff] }
  0x1a   :  { %186 = vmatpush3.bf16.msra.mxu0 %v185_v7 }
  0x1b   :  { %187 = vmatprep.subr.bf16.mxu0 %v238_v0 }
  0x1e   :  { %189 = vmatpush3.bf16.msra.mxu0 %v188_v10 }
  0x1f   :  { %190 = vmatprep.subr.bf16.mxu0 %v238_v0 }
  0x22   :  { %192 = vmatpush3.bf16.msra.mxu0 %v191_v13 }
  0x23   :  { %193 = vmatprep.subr.bf16.mxu0 %v238_v0 }
  0x26   :  { %195 = vmatpush3.bf16.msra.mxu0 %v194_v16 }
  0x27   :  { %196 = vmatprep.subr.bf16.mxu0 %v238_v0 }
  0x2a   :  { %198 = vmatpush3.bf16.msra.mxu0 %v197_v19 }
  0x2b   :  { %199 = vmatprep.subr.bf16.mxu0 %v238_v0 }
  0x2e   :  { %201 = vmatpush3.bf16.msra.mxu0 %v200_v22 }
  0x2f   :  { %202 = vmatprep.subr.bf16.mxu0 %v238_v0 }
  0x32   :  { %204 = vmatpush3.bf16.msra.mxu0 %v203_v25 }
  0x35   :  { %179 = vmatmul.mubr.f32.vlgmr.msra.gmra.mrb[0].mxu0 %v28_v26 }
 0x108   :  { %v118_v28 = vpop.f32.mrb[0].mxu0 }
 0x109   :  { %v119_v29 = vadd.f32 %v128_v27, %v118_v28  ;;  %v180_v30 = vpop.f32.mrb[1].mxu0 }
 0x10b   :  { %122 = vst [vmem:[%s285_s3] sm:$0xff] %v119_v29 }
 0x10c   :  { %127 = vsyncpa [#allocation3], 1 }

</bundles_post_ra>
